<compile_context>
chip_gen: v7x
topology: tpu7x:2x2x1
jax: 0.10.0
libtpu: 0.0.40
codegen_flags: <defaults>
</compile_context>

<pallas_src>
import functools

import jax
import jax.numpy as jnp
from jax import lax
from jax.experimental import pallas as pl
from jax.experimental.pallas import tpu as pltpu


D_IN, D_H1, D_H2, D_OUT = 20, 64, 32, 16


def nestmlp_kernel(x_ref, w1_ref, b1_ref, w2_ref, b2_ref, w3_ref, b3_ref, oT_ref):
    # Layer 1: contract the feature axis of BOTH operands.
    #   w1: (64, 20)  x block: (TM, 20)  ->  h1: (64, TM)   (batch on lanes)
    h1 = lax.dot_general(
        w1_ref[...], x_ref[...],
        dimension_numbers=(((1,), (1,)), ((), ())),
        preferred_element_type=jnp.float32)
    h1 = jnp.maximum(h1 + b1_ref[...], 0.0)
    # Layer 2: (32, 64) @ (64, TM) + (32, 1), ReLU -> (32, TM)
    h2 = jnp.dot(w2_ref[...], h1, preferred_element_type=jnp.float32)
    h2 = jnp.maximum(h2 + b2_ref[...], 0.0)
    # Output layer: (16, 32) @ (32, TM) + (16, 1) -> (16, TM), lane-dense store.
    out = jnp.dot(w3_ref[...], h2, preferred_element_type=jnp.float32)
    oT_ref[...] = (out + b3_ref[...]).astype(oT_ref.dtype)


def _round_up(x, m):
    return ((x + m - 1) // m) * m


@functools.partial(jax.jit, static_argnames=("tm", "stream_dtype"))
def nestmlp_forward(x, params, *, tm=8192, stream_dtype=jnp.bfloat16):
    """x: (B, 20) float32.  params: PyTorch-layout weights (out, in), biases (out, 1).

    Returns (B, 16) float32.  `stream_dtype` controls the HBM streaming dtype of
    x and W1 only; accumulation is always f32.
    """
    w1 = params["w1"].astype(stream_dtype)
    b1, w2, b2, w3, b3 = (params["b1"], params["w2"], params["b2"],
                          params["w3"], params["b3"])

    B = x.shape[0]
    # Batch tile: multiple of 128 (lane width), scaled down for small B.
    tm = max(128, _round_up(tm, 128))
    TM = min(tm, _round_up(B, 128))
    Bp = _round_up(B, TM)

    # Native layout in; only the tail tile is zero-padded (no HBM transpose).
    xs = x.astype(stream_dtype)
    if Bp != B:
        xs = jnp.pad(xs, ((0, Bp - B), (0, 0)))

    grid = (Bp // TM,)

    # Streamed blocks walk the batch axis; weights/biases are block-constant
    # (same (0, 0) block every step) so they stay resident in VMEM.
    x_spec = pl.BlockSpec((TM, D_IN), lambda i: (i, 0))
    o_spec = pl.BlockSpec((D_OUT, TM), lambda i: (0, i))
    resident = lambda a: pl.BlockSpec(a.shape, lambda i: (0, 0))

    outT = pl.pallas_call(
        nestmlp_kernel,
        out_shape=jax.ShapeDtypeStruct((D_OUT, Bp), jnp.float32),
        grid=grid,
        in_specs=[
            x_spec,
            resident(w1), resident(b1),
            resident(w2), resident(b2),
            resident(w3), resident(b3),
        ],
        out_specs=o_spec,
        compiler_params=pltpu.CompilerParams(
            dimension_semantics=("parallel",),
        ),
    )(xs, w1, b1, w2, b2, w3, b3)

    # Back to the user-facing (B, 16) layout, dropping padded columns.
    return outT[:, :B].T


def init_params(key):
    """Deterministic synthetic init matching nn.Linear shapes.

    Weights in PyTorch (out_features, in_features) layout; biases as
    (out_features, 1) columns so they broadcast over the batch/lane axis.
    """
    keys = jax.random.split(key, 6)

    def linear(kw, kb, fan_in, fan_out):
        bound = 1.0 / jnp.sqrt(fan_in)
        w = jax.random.uniform(kw, (fan_out, fan_in), jnp.float32, -bound, bound)
        b = jax.random.uniform(kb, (fan_out, 1), jnp.float32, -bound, bound)
        return w, b

    w1, b1 = linear(keys[0], keys[1], D_IN, D_H1)
    w2, b2 = linear(keys[2], keys[3], D_H1, D_H2)
    w3, b3 = linear(keys[4], keys[5], D_H2, D_OUT)
    return dict(w1=w1, b1=b1, w2=w2, b2=b2, w3=w3, b3=b3)


def nestmlp_reference(x, p, *, first_layer_dtype=jnp.float32):
    """Pure-JAX reference.  `first_layer_dtype=bfloat16` mirrors the kernel's
    bf16 streaming of x/W1 (round-trip cast) while keeping f32 math."""
    xr = x.astype(first_layer_dtype).astype(jnp.float32)
    w1 = p["w1"].astype(first_layer_dtype).astype(jnp.float32)
    h1 = jnp.maximum(xr @ w1.T + p["b1"].T, 0.0)
    h2 = jnp.maximum(h1 @ p["w2"].T + p["b2"].T, 0.0)
    return h2 @ p["w3"].T + p["b3"].T


if __name__ == "__main__":
    key = jax.random.PRNGKey(0)
    k_x, k_p, k_big, k_huge = jax.random.split(key, 4)

    params = init_params(k_p)

    # Matches `X = torch.rand(2, 20)` from the reference script.
    x = jax.random.uniform(k_x, (2, 20), jnp.float32)

    # Default (bf16-streamed) path: compare against a reference that applies
    # the same bf16 rounding to x/W1 (tight), and against the pure-f32
    # reference (loose, semantic sanity).
    out = jax.block_until_ready(nestmlp_forward(x, params))
    assert out.shape == (2, 16), out.shape
    ref_bf = nestmlp_reference(x, params, first_layer_dtype=jnp.bfloat16)
    ref_f32 = nestmlp_reference(x, params)
    assert jnp.allclose(out, ref_bf, atol=5e-3, rtol=5e-3), "bf16 path mismatch (B=2)"
    assert jnp.allclose(out, ref_f32, atol=5e-2, rtol=5e-2), "bf16 vs f32 sanity (B=2)"

    # Exact f32 streaming path (same kernel, stream_dtype=f32): tight check.
    out32 = jax.block_until_ready(nestmlp_forward(x, params, stream_dtype=jnp.float32))
    assert jnp.allclose(out32, ref_f32, atol=1e-4, rtol=1e-4), "f32 path mismatch (B=2)"

    # Multi-tile grid + non-multiple tail (B=300, TM=128 -> 3 tiles), bf16.
    x_big = jax.random.uniform(k_big, (300, 20), jnp.float32)
    out_big = jax.block_until_ready(nestmlp_forward(x_big, params, tm=128))
    ref_big = nestmlp_reference(x_big, params, first_layer_dtype=jnp.bfloat16)
    assert out_big.shape == (300, 16), out_big.shape
    assert jnp.allclose(out_big, ref_big, atol=5e-3, rtol=5e-3), "mismatch (B=300, bf16)"

    # Robustness: caller-supplied tm not a multiple of 128 gets rounded (200->256).
    out_big32 = jax.block_until_ready(
        nestmlp_forward(x_big, params, tm=200, stream_dtype=jnp.float32))
    ref_big32 = nestmlp_reference(x_big, params)
    assert jnp.allclose(out_big32, ref_big32, atol=1e-4, rtol=1e-4), "mismatch (B=300, tm=200)"

    # Large-batch path exercising the default TM=8192 tile (3 grid steps).
    x_huge = jax.random.uniform(k_huge, (20000, 20), jnp.float32)
    out_huge = jax.block_until_ready(nestmlp_forward(x_huge, params))
    ref_huge = nestmlp_reference(x_huge, params, first_layer_dtype=jnp.bfloat16)
    assert out_huge.shape == (20000, 16), out_huge.shape
    assert jnp.allclose(out_huge, ref_huge, atol=5e-3, rtol=5e-3), "mismatch (B=20000)"

    print("KERNEL_OK")
</pallas_src>

<mosaic_0001>
module attributes {stable_mosaic.version = 11 : i64} {
  func.func @nestmlp_kernel(%arg0: i32, %arg1: memref<128x20xbf16, #tpu.memory_space<vmem>>, %arg2: memref<64x20xbf16, #tpu.memory_space<vmem>>, %arg3: memref<64x1xf32, #tpu.memory_space<vmem>>, %arg4: memref<32x64xf32, #tpu.memory_space<vmem>>, %arg5: memref<32x1xf32, #tpu.memory_space<vmem>>, %arg6: memref<16x32xf32, #tpu.memory_space<vmem>>, %arg7: memref<16x1xf32, #tpu.memory_space<vmem>>, %arg8: memref<16x128xf32, #tpu.memory_space<vmem>>) attributes {dimension_semantics = [#tpu.dimension_semantics<parallel>], iteration_bounds = array<i64: 1>, scalar_prefetch = 0 : i64, scratch_operands = 0 : i64, tpu.core_type = #tpu.core_type<tc>, window_params = [{transform_indices = @transform_0, window_bounds = array<i64: 128, 20>}, {pipeline_mode = #tpu.pipeline_mode<synchronous>, transform_indices = @transform_1, window_bounds = array<i64: 64, 20>}, {pipeline_mode = #tpu.pipeline_mode<synchronous>, transform_indices = @transform_2, window_bounds = array<i64: 64, 1>}, {pipeline_mode = #tpu.pipeline_mode<synchronous>, transform_indices = @transform_3, window_bounds = array<i64: 32, 64>}, {pipeline_mode = #tpu.pipeline_mode<synchronous>, transform_indices = @transform_4, window_bounds = array<i64: 32, 1>}, {pipeline_mode = #tpu.pipeline_mode<synchronous>, transform_indices = @transform_5, window_bounds = array<i64: 16, 32>}, {pipeline_mode = #tpu.pipeline_mode<synchronous>, transform_indices = @transform_6, window_bounds = array<i64: 16, 1>}, {transform_indices = @transform_7, window_bounds = array<i64: 16, 128>}]} {
    %c0 = arith.constant 0 : index
    %c0_0 = arith.constant 0 : index
    %0 = vector.load %arg2[%c0, %c0_0] : memref<64x20xbf16, #tpu.memory_space<vmem>>, vector<64x20xbf16>
    %c0_1 = arith.constant 0 : index
    %c0_2 = arith.constant 0 : index
    %1 = vector.load %arg1[%c0_1, %c0_2] : memref<128x20xbf16, #tpu.memory_space<vmem>>, vector<128x20xbf16>
    %cst = arith.constant dense<0.000000e+00> : vector<64x128xf32>
    %2 = tpu.matmul %0, %1, %cst {dimension_numbers = #tpu.dot_dimension_numbers<[1], [1], [0], [0], [0, 0, 1, 0], [], []>} : vector<64x20xbf16>, vector<128x20xbf16>, vector<64x128xf32> -> vector<64x128xf32>
    %c0_3 = arith.constant 0 : index
    %c0_4 = arith.constant 0 : index
    %3 = vector.load %arg3[%c0_3, %c0_4] : memref<64x1xf32, #tpu.memory_space<vmem>>, vector<64x1xf32>
    %4 = vector.broadcast %3 : vector<64x1xf32> to vector<64x128xf32>
    %5 = arith.addf %2, %4 : vector<64x128xf32>
    %cst_5 = arith.constant 0.000000e+00 : f32
    %6 = vector.broadcast %cst_5 : f32 to vector<64x128xf32>
    %7 = arith.maximumf %5, %6 : vector<64x128xf32>
    %c0_6 = arith.constant 0 : index
    %c0_7 = arith.constant 0 : index
    %8 = vector.load %arg4[%c0_6, %c0_7] : memref<32x64xf32, #tpu.memory_space<vmem>>, vector<32x64xf32>
    %cst_8 = arith.constant dense<0.000000e+00> : vector<32x128xf32>
    %9 = tpu.matmul %8, %7, %cst_8 {dimension_numbers = #tpu.dot_dimension_numbers<[1], [0], [0], [1], [0, 0, 1, 1], [], []>} : vector<32x64xf32>, vector<64x128xf32>, vector<32x128xf32> -> vector<32x128xf32>
    %c0_9 = arith.constant 0 : index
    %c0_10 = arith.constant 0 : index
    %10 = vector.load %arg5[%c0_9, %c0_10] : memref<32x1xf32, #tpu.memory_space<vmem>>, vector<32x1xf32>
    %11 = vector.broadcast %10 : vector<32x1xf32> to vector<32x128xf32>
    %12 = arith.addf %9, %11 : vector<32x128xf32>
    %cst_11 = arith.constant 0.000000e+00 : f32
    %13 = vector.broadcast %cst_11 : f32 to vector<32x128xf32>
    %14 = arith.maximumf %12, %13 : vector<32x128xf32>
    %c0_12 = arith.constant 0 : index
    %c0_13 = arith.constant 0 : index
    %15 = vector.load %arg6[%c0_12, %c0_13] : memref<16x32xf32, #tpu.memory_space<vmem>>, vector<16x32xf32>
    %cst_14 = arith.constant dense<0.000000e+00> : vector<16x128xf32>
    %16 = tpu.matmul %15, %14, %cst_14 {dimension_numbers = #tpu.dot_dimension_numbers<[1], [0], [0], [1], [0, 0, 1, 1], [], []>} : vector<16x32xf32>, vector<32x128xf32>, vector<16x128xf32> -> vector<16x128xf32>
    %c0_15 = arith.constant 0 : index
    %c0_16 = arith.constant 0 : index
    %17 = vector.load %arg7[%c0_15, %c0_16] : memref<16x1xf32, #tpu.memory_space<vmem>>, vector<16x1xf32>
    %18 = vector.broadcast %17 : vector<16x1xf32> to vector<16x128xf32>
    %19 = arith.addf %16, %18 : vector<16x128xf32>
    %c0_17 = arith.constant 0 : index
    %c0_18 = arith.constant 0 : index
    %20 = vector.load %arg8[%c0_17, %c0_18] : memref<16x128xf32, #tpu.memory_space<vmem>>, vector<16x128xf32>
    tpu.vector_store %arg8[%c0_17, %c0_18], %19 {strides = array<i32>} : memref<16x128xf32, #tpu.memory_space<vmem>>, vector<16x128xf32>,
    return
  }
  func.func @transform_0(%arg0: i32) -> (i32, i32) {
    %c0_i32 = arith.constant 0 : i32
    %c0_i32_0 = arith.constant 0 : i32
    return %arg0, %c0_i32 : i32, i32
  }
  func.func @transform_1(%arg0: i32) -> (i32, i32) {
    %c0_i32 = arith.constant 0 : i32
    %c0_i32_0 = arith.constant 0 : i32
    %c0_i32_1 = arith.constant 0 : i32
    return %c0_i32, %c0_i32_0 : i32, i32
  }
  func.func @transform_2(%arg0: i32) -> (i32, i32) {
    %c0_i32 = arith.constant 0 : i32
    %c0_i32_0 = arith.constant 0 : i32
    %c0_i32_1 = arith.constant 0 : i32
    return %c0_i32, %c0_i32_0 : i32, i32
  }
  func.func @transform_3(%arg0: i32) -> (i32, i32) {
    %c0_i32 = arith.constant 0 : i32
    %c0_i32_0 = arith.constant 0 : i32
    %c0_i32_1 = arith.constant 0 : i32
    return %c0_i32, %c0_i32_0 : i32, i32
  }
  func.func @transform_4(%arg0: i32) -> (i32, i32) {
    %c0_i32 = arith.constant 0 : i32
    %c0_i32_0 = arith.constant 0 : i32
    %c0_i32_1 = arith.constant 0 : i32
    return %c0_i32, %c0_i32_0 : i32, i32
  }
  func.func @transform_5(%arg0: i32) -> (i32, i32) {
    %c0_i32 = arith.constant 0 : i32
    %c0_i32_0 = arith.constant 0 : i32
    %c0_i32_1 = arith.constant 0 : i32
    return %c0_i32, %c0_i32_0 : i32, i32
  }
  func.func @transform_6(%arg0: i32) -> (i32, i32) {
    %c0_i32 = arith.constant 0 : i32
    %c0_i32_0 = arith.constant 0 : i32
    %c0_i32_1 = arith.constant 0 : i32
    return %c0_i32, %c0_i32_0 : i32, i32
  }
  func.func @transform_7(%arg0: i32) -> (i32, i32) {
    %c0_i32 = arith.constant 0 : i32
    %c0_i32_0 = arith.constant 0 : i32
    return %c0_i32, %arg0 : i32, i32
  }
}

</mosaic_0001>

<bundles_post_ra>
// kernel: nestmlp_forward.1
= control target key start
LH: loop header
LB: loop body
LE: loop exit
PB: predicated region body
PF: predicated region fallthrough
CT: control target
= control target key end

     0   :  { %vm159_vm0 = vcmask 162816   ;;  %v657_v1 = vmov 0   ;;  %vm297_vm1 = vcmask 523264   ;;  %vm413_vm2 = vcmask 261120   ;;  %s826_s0 = inlined_call_operand.vmem [shape: bf16[128,20], index: 0, kind: input, shape index: {}]   ;;  %s827_s1 = inlined_call_operand.vmem [shape: bf16[64,20], index: 1, kind: input, shape index: {}]   ;;  %s828_s2 = inlined_call_operand.vmem [shape: f32[64,1], index: 2, kind: input, shape index: {}]   ;;  %s829_s4 = inlined_call_operand.vmem [shape: f32[32,1], index: 4, kind: input, shape index: {}]   ;;  %s830_s6 = inlined_call_operand.vmem [shape: f32[16,1], index: 6, kind: input, shape index: {}]   ;;  %s831_s3 = inlined_call_operand.vmem [shape: f32[32,64], index: 3, kind: input, shape index: {}]   ;;  %s832_s5 = inlined_call_operand.vmem [shape: f32[16,32], index: 5, kind: input, shape index: {}]   ;;  %s833_s7 = inlined_call_operand.vmem [shape: f32[16,128], index: 7, kind: output, shape index: {}]  }
   0x1   :  { %v645_v0 = vld [vmem:[%s826_s0] sm:$0xff]   ;;  %643 = vset.pattern.permute.xlu0 %v657_v1  ;;  %644 = vset.pattern.permute.xlu1 %v657_v1  ;;  %v646_v2 = vld [vmem:[%s826_s0 + $0x8] sm:$0xff]   ;;  %v647_v4 = vld [vmem:[%s826_s0 + $0x10] sm:$0xff]  }
   0x2   :  { %634 = vmatprep.subr.msk.bf16.mxu0 %vm159_vm0, %v645_v0  ;;  %v173_v3 = vsel %vm159_vm0, %v645_v0, 0  ;;  %v176_v5 = vsel %vm159_vm0, %v646_v2, 0  ;;  %v653_v6 = vld [vmem:[%s827_s1] sm:$0xff]   ;;  %v53_v8 = vld [vmem:[%s828_s2 + $0x10] sm:$0xff]  ;;  %v52_v9 = vld [vmem:[%s828_s2 + $0x8] sm:$0xff]  ;;  %v179_v11 = vsel %vm159_vm0, %v647_v4, 0 }
   0x3   :  { %554 = vmatpush3.bf16.xpose.msra.mxu0 %v173_v3  ;;  %569 = vmatprep.mubr.msk.bf16.mxu0 %vm159_vm0, %v653_v6  ;;  %v51_v7 = vld [vmem:[%s828_s2] sm:$0xff]  ;;  %v54_v10 = vld [vmem:[%s828_s2 + $0x18] sm:$0xff]  ;;  %v56_v14 = vld [vmem:[%s828_s2 + $0x28] sm:$0xff] }
   0x4   :  { %635 = vmatprep.subr.msk.bf16.mxu0 %vm159_vm0, %v646_v2  ;;  %61 = vperm.xlu0 %643, %v51_v7   ;;  %v648_v12 = vld [vmem:[%s826_s0 + $0x18] sm:$0xff]   ;;  %v55_v13 = vld [vmem:[%s828_s2 + $0x20] sm:$0xff]  ;;  %v57_v15 = vld [vmem:[%s828_s2 + $0x30] sm:$0xff] }
   0x5   :  { %71 = vperm.xlu1 %644, %v53_v8   ;;  %v58_v16 = vld [vmem:[%s828_s2 + $0x38] sm:$0xff]  ;;  %v182_v17 = vsel %vm159_vm0, %v648_v12, 0  ;;  %v649_v18 = vld [vmem:[%s826_s0 + $0x20] sm:$0xff]   ;;  %v274_v20 = vld [vmem:[%s829_s4 + $0x8] sm:$0xff] }
   0x6   :  { %v273_v19 = vld [vmem:[%s829_s4] sm:$0xff]  ;;  %v275_v21 = vld [vmem:[%s829_s4 + $0x10] sm:$0xff]  ;;  %v276_v22 = vld [vmem:[%s829_s4 + $0x18] sm:$0xff]  ;;  %v185_v23 = vsel %vm159_vm0, %v649_v18, 0 }
   0x7   :  { %v650_v24 = vld [vmem:[%s826_s0 + $0x28] sm:$0xff]   ;;  %v401_v25 = vld [vmem:[%s830_s6] sm:$0xff]  ;;  %v651_v28 = vld [vmem:[%s826_s0 + $0x30] sm:$0xff]  }
   0x8   :  { %66 = vperm.xlu0 %643, %v52_v9   ;;  %v402_v26 = vld [vmem:[%s830_s6 + $0x8] sm:$0xff]  ;;  %v188_v27 = vsel %vm159_vm0, %v650_v24, 0  ;;  %v191_v29 = vsel %vm159_vm0, %v651_v28, 0  ;;  %v652_v30 = vld [vmem:[%s826_s0 + $0x38] sm:$0xff]   ;;  %v655_v33 = vld [vmem:[%s827_s1 + $0x10] sm:$0xff]  }
   0x9   :  { %76 = vperm.xlu1 %644, %v54_v10   ;;  %v194_v31 = vsel %vm159_vm0, %v652_v30, 0  ;;  %v654_v32 = vld [vmem:[%s827_s1 + $0x8] sm:$0xff]   ;;  %v656_v34 = vld [vmem:[%s827_s1 + $0x18] sm:$0xff]   ;;  %v269_v35 = vld [vmem:[%s831_s3] sm:$0xff] }
   0xa   :  { %593 = vmatprep.mubr.msk.f32.mxu1 %vm297_vm1, %v269_v35  ;;  %v270_v8 = vld [vmem:[%s831_s3 + $0x8] sm:$0xff]  ;;  %v271_v9 = vld [vmem:[%s831_s3 + $0x10] sm:$0xff]  ;;  %v272_v10 = vld [vmem:[%s831_s3 + $0x18] sm:$0xff] }
   0xb   :  { %556 = vmatpush3.bf16.xpose.msra.mxu0 %v176_v5 }
   0xc   :  { %636 = vmatprep.subr.msk.bf16.mxu0 %vm159_vm0, %v647_v4  ;;  %81 = vperm.xlu0 %643, %v55_v13  }
   0xd   :  { %86 = vperm.xlu1 %644, %v56_v14  }
  0x10   :  { %91 = vperm.xlu0 %643, %v57_v15  }
  0x11   :  { %96 = vperm.xlu1 %644, %v58_v16  }
  0x13   :  { %558 = vmatpush3.bf16.xpose.msra.mxu0 %v179_v11  ;;  %v399_v11 = vld [vmem:[%s832_s5] sm:$0xff] }
  0x14   :  { %637 = vmatprep.subr.msk.bf16.mxu0 %vm159_vm0, %v648_v12  ;;  %279 = vperm.xlu0 %643, %v273_v19  }
  0x15   :  { %284 = vperm.xlu1 %644, %v274_v20  }
  0x18   :  { %289 = vperm.xlu0 %643, %v275_v21  }
  0x19   :  { %294 = vperm.xlu1 %644, %v276_v22  }
  0x1b   :  { %560 = vmatpush3.bf16.xpose.msra.mxu0 %v182_v17 }
  0x1c   :  { %638 = vmatprep.subr.msk.bf16.mxu0 %vm159_vm0, %v649_v18  ;;  %405 = vperm.xlu0 %643, %v401_v25  }
  0x1d   :  { %410 = vperm.xlu1 %644, %v402_v26  }
  0x23   :  { %562 = vmatpush3.bf16.xpose.msra.mxu0 %v185_v23 }
  0x24   :  { %639 = vmatprep.subr.msk.bf16.mxu0 %vm159_vm0, %v650_v24 }
  0x2b   :  { %564 = vmatpush3.bf16.xpose.msra.mxu0 %v188_v27 }
  0x2c   :  { %640 = vmatprep.subr.msk.bf16.mxu0 %vm159_vm0, %v651_v28 }
  0x33   :  { %566 = vmatpush3.bf16.xpose.msra.mxu0 %v191_v29 }
  0x34   :  { %641 = vmatprep.subr.msk.bf16.mxu0 %vm159_vm0, %v652_v30  ;;  %v400_v30 = vld [vmem:[%s832_s5 + $0x8] sm:$0xff] }
  0x3b   :  { %568 = vmatpush3.bf16.xpose.msra.mxu0 %v194_v31 }
  0x42   :  { %570 = vmatmul.mubr.msk.bf16.vlgmr.msra.gmra.mrb[0].mxu0 %vm159_vm0, %v654_v32 }
  0x43   :  { %573 = vmatprep.mubr.msk.bf16.mxu0 %vm159_vm0, %v655_v33 }
  0x4a   :  { %574 = vmatmul.mubr.msk.bf16.gmra.mrb[4].mxu0 %vm159_vm0, %v656_v34 }
  0x83   :  { %v62_v36 = vpop.permute.xlu0 %61 }
  0x84   :  { %v72_v37 = vpop.permute.xlu1 %71 }
  0x87   :  { %v67_v38 = vpop.permute.xlu0 %66 }
  0x88   :  { %v77_v39 = vpop.permute.xlu1 %76 }
  0x8b   :  { %v82_v43 = vpop.permute.xlu0 %81 }
  0x8c   :  { %v87_v48 = vpop.permute.xlu1 %86 }
  0x8f   :  { %v92_v55 = vpop.permute.xlu0 %91 }
  0x90   :  { %v97_v60 = vpop.permute.xlu1 %96 }
  0x93   :  { %v280_v13 = vpop.permute.xlu0 %279 }
  0x94   :  { %v285_v12 = vpop.permute.xlu1 %284 }
  0x97   :  { %v290_v22 = vpop.permute.xlu0 %289 }
  0x98   :  { %v295_v19 = vpop.permute.xlu1 %294 }
  0x9b   :  { %v406_v33 = vpop.permute.xlu0 %405 }
  0x9c   :  { %v411_v31 = vpop.permute.xlu1 %410 }
 0x115   :  { %v571_v40 = vpop.f32.mrb[0].mxu0 }
 0x116   :  { %v239_v41 = vadd.f32 %v571_v40, %v72_v37  ;;  %v230_v42 = vpop.f32.mrb[1].mxu0 }
 0x117   :  { %v231_v44 = vadd.f32 %v230_v42, %v62_v36  ;;  %v572_v45 = vpop.f32.mrb[2].mxu0 }
 0x118   :  { %v242_v46 = vadd.f32 %v572_v45, %v77_v39  ;;  %v233_v47 = vpop.f32.mrb[3].mxu0  ;;  %v263_v50 = vmax.f32 %v239_v41, 0.0 }
 0x119   :  { %v234_v49 = vadd.f32 %v233_v47, %v67_v38  ;;  %v261_v52 = vmax.f32 %v231_v44, 0.0 }
 0x11a   :  { %v264_v51 = vmax.f32 %v242_v46, 0.0 }
 0x11b   :  { %v262_v53 = vmax.f32 %v234_v49, 0.0 }
 0x11c   :  { %v614_v54 = vpack.c.bf16 %v264_v51, %v263_v50 }
 0x11d   :  { %v575_v56 = vpop.f32.mrb[4].mxu0  ;;  %v610_v57 = vpack.c.bf16 %v262_v53, %v261_v52 }
 0x11e   :  { %v255_v58 = vadd.f32 %v575_v56, %v92_v55  ;;  %v246_v59 = vpop.f32.mrb[5].mxu0 }
 0x11f   :  { %v247_v61 = vadd.f32 %v246_v59, %v82_v43  ;;  %v576_v62 = vpop.f32.mrb[6].mxu0  ;;  %611 = vmatprep.subr.bf16.mxu1 %v610_v57 }
 0x120   :  { %v258_v63 = vadd.f32 %v576_v62, %v97_v60  ;;  %v249_v0 = vpop.f32.mrb[7].mxu0  ;;  %613 = vmatpush3.bf16.msra.mxu1 %v610_v57  ;;  %v267_v2 = vmax.f32 %v255_v58, 0.0 }
 0x121   :  { %v250_v1 = vadd.f32 %v249_v0, %v87_v48  ;;  %615 = vmatprep.subr.bf16.mxu1 %v614_v54  ;;  %v265_v4 = vmax.f32 %v247_v61, 0.0 }
 0x122   :  { %v268_v3 = vmax.f32 %v258_v63, 0.0 }
 0x123   :  { %v266_v5 = vmax.f32 %v250_v1, 0.0 }
 0x124   :  { %v622_v6 = vpack.c.bf16 %v268_v3, %v267_v2  ;;  %617 = vmatpush3.bf16.msra.mxu1 %v614_v54 }
 0x125   :  { %v618_v7 = vpack.c.bf16 %v266_v5, %v265_v4 }
 0x127   :  { %619 = vmatprep.subr.bf16.mxu1 %v618_v7 }
 0x128   :  { %621 = vmatpush3.bf16.msra.mxu1 %v618_v7 }
 0x129   :  { %623 = vmatprep.subr.bf16.mxu1 %v622_v6 }
 0x12c   :  { %625 = vmatpush3.bf16.msra.mxu1 %v622_v6 }
 0x12f   :  { %594 = vmatmul.mubr.msk.f32.vlgmr.msra.gmra.mrb[0].mxu1 %vm297_vm1, %v270_v8 }
 0x130   :  { %596 = vmatprep.mubr.msk.f32.mxu1 %vm297_vm1, %v271_v9 }
 0x133   :  { %597 = vmatmul.mubr.msk.f32.gmra.mrb[2].mxu1 %vm297_vm1, %v272_v10 }
 0x134   :  { %607 = vmatprep.mubr.msk.f32.mxu1 %vm413_vm2, %v399_v11 }
 0x202   :  { %v595_v14 = vpop.f32.mrb[0].mxu1 }
 0x203   :  { %v382_v15 = vadd.f32 %v595_v14, %v285_v12  ;;  %v376_v16 = vpop.f32.mrb[1].mxu1 }
 0x204   :  { %v377_v17 = vadd.f32 %v376_v16, %v280_v13 }
 0x205   :  { %v396_v18 = vmax.f32 %v382_v15, 0.0 }
 0x206   :  { %v395_v20 = vmax.f32 %v377_v17, 0.0  ;;  %v598_v21 = vpop.f32.mrb[2].mxu1 }
 0x207   :  { %v392_v23 = vadd.f32 %v598_v21, %v295_v19  ;;  %v386_v24 = vpop.f32.mrb[3].mxu1 }
 0x208   :  { %v626_v25 = vpack.c.bf16 %v396_v18, %v395_v20  ;;  %v387_v26 = vadd.f32 %v386_v24, %v290_v22 }
 0x209   :  { %v398_v27 = vmax.f32 %v392_v23, 0.0 }
 0x20a   :  { %v397_v28 = vmax.f32 %v387_v26, 0.0  ;;  %627 = vmatprep.subr.bf16.mxu1 %v626_v25 }
 0x20b   :  { %629 = vmatpush3.bf16.msra.mxu1 %v626_v25 }
 0x20c   :  { %v630_v29 = vpack.c.bf16 %v398_v27, %v397_v28 }
 0x20e   :  { %631 = vmatprep.subr.bf16.mxu1 %v630_v29 }
 0x20f   :  { %633 = vmatpush3.bf16.msra.mxu1 %v630_v29 }
 0x212   :  { %608 = vmatmul.mubr.msk.f32.vlgmr.msra.gmra.mrb[4].mxu1 %vm413_vm2, %v400_v30 }
 0x2e5   :  { %v609_v32 = vpop.f32.mrb[4].mxu1 }
 0x2e6   :  { %v492_v34 = vadd.f32 %v609_v32, %v411_v31  ;;  %v486_v35 = vpop.f32.mrb[5].mxu1 }
 0x2e7   :  { %v487_v36 = vadd.f32 %v486_v35, %v406_v33 }
 0x2e8   :  { %496 = vst [vmem:[%s833_s7 + $0x8] sm:$0xff] %v492_v34 }
 0x2e9   :  { %495 = vst [vmem:[%s833_s7] sm:$0xff] %v487_v36 }

</bundles_post_ra>
